<compile_context>
chip_gen: v5e
topology: v5e:2x2
jax: 0.10.0
libtpu: 0.0.40
codegen_flags: <defaults>
</compile_context>

<pallas_src>
import jax
import jax.numpy as jnp
from jax.experimental import pallas as pl
from jax.experimental.pallas import tpu as pltpu

LANE = 128
BF16_SUBLANES = 16  # bf16 packs 16 sublanes per vreg


def _round_up(n, m):
    return ((n + m - 1) // m) * m


def _pick_chunk(t, target):
    """Largest divisor of t that is <= target (timesteps per grid step)."""
    k = max(1, min(target, t))
    while t % k:
        k -= 1
    return k


def _sigmoid(x):
    # tanh-form sigmoid: one EUP op instead of exp + reciprocal.
    return 0.5 * jnp.tanh(0.5 * x) + 0.5


# ----------------------------------------------------------------------------
# Parameter preparation (done once, outside the kernels).
# ----------------------------------------------------------------------------
def prepare_params(wx, wh, b):
    """wx: (D, 4H), wh: (H, 4H), b: (4H,); gate order [i, f, g, o].

    Pads each gate block to Hp = round_up(H, 128) lanes (so every gate slice
    inside the kernels is a free, aligned view), zero-pads the padded hidden
    rows of Wh for the sequence kernel, and casts weights to bf16 (MXU native).
    """
    D, G = wx.shape
    H = G // 4
    Hp = _round_up(H, LANE)

    def pad_gates(w):  # (..., 4H) -> (..., 4*Hp), each gate block 128-aligned
        parts = [w[..., k * H:(k + 1) * H] for k in range(4)]
        pad = [(0, 0)] * (w.ndim - 1) + [(0, Hp - H)]
        return jnp.concatenate([jnp.pad(p, pad) for p in parts], axis=-1)

    wx_p = pad_gates(wx).astype(jnp.bfloat16)             # (D,  4*Hp)
    wh_rows = pad_gates(wh).astype(jnp.bfloat16)           # (H,  4*Hp)
    wh_p = jnp.pad(wh_rows, ((0, Hp - H), (0, 0)))         # (Hp, 4*Hp)
    b_p = pad_gates(b[None, :]).astype(jnp.float32)        # (1,  4*Hp)

    return dict(wx=wx_p, wh=wh_p, wh_rows=wh_rows, b=b_p, D=D, H=H, Hp=Hp)


# ----------------------------------------------------------------------------
# Single-step kernel (== LSTMCell.forward).
#   x, h passed unpadded; two small MXU matmuls; f32 gate math; lane-dense
#   (B, Hp) outputs with 128-aligned gate slices.
# ----------------------------------------------------------------------------
def _lstm_cell_kernel(x_ref, h_ref, c_ref, wx_ref, wh_ref, b_ref,
                      c_out_ref, h_out_ref):
    Hp = c_out_ref.shape[-1]
    gates = (jnp.dot(x_ref[...].astype(jnp.bfloat16), wx_ref[...],
                     preferred_element_type=jnp.float32)
             + jnp.dot(h_ref[...].astype(jnp.bfloat16), wh_ref[...],
                       preferred_element_type=jnp.float32)
             + b_ref[...])
    i = _sigmoid(gates[:, 0 * Hp:1 * Hp])   # 128-lane aligned slices
    f = _sigmoid(gates[:, 1 * Hp:2 * Hp])
    g = jnp.tanh(gates[:, 2 * Hp:3 * Hp])
    o = _sigmoid(gates[:, 3 * Hp:4 * Hp])
    c = f * c_ref[...] + i * g
    c_out_ref[...] = c                      # lane-dense (B, 128*k) stores
    h_out_ref[...] = o * jnp.tanh(c)


def lstm_cell(x, C, h, params):
    """Single LSTM cell step (matches the PyTorch forward). Returns (c, h)."""
    H, Hp = params["H"], params["Hp"]
    B = x.shape[0]

    # Only C needs a tiny lane pad so the elementwise update matches the
    # 128-aligned gate slices; padded lanes provably stay zero.
    c_p = jnp.pad(C, ((0, 0), (0, Hp - H)))

    bytes_w = params["wx"].size * 2 + params["wh_rows"].size * 2
    vmem_limit = int(min(max(4 * bytes_w + (8 << 20), 32 << 20), 96 << 20))

    c_out, h_out = pl.pallas_call(
        _lstm_cell_kernel,
        out_shape=(jax.ShapeDtypeStruct((B, Hp), jnp.float32),
                   jax.ShapeDtypeStruct((B, Hp), jnp.float32)),
        in_specs=[pl.BlockSpec(memory_space=pltpu.MemorySpace.VMEM)] * 6,
        out_specs=(pl.BlockSpec(memory_space=pltpu.MemorySpace.VMEM),
                   pl.BlockSpec(memory_space=pltpu.MemorySpace.VMEM)),
        compiler_params=pltpu.CompilerParams(vmem_limit_bytes=vmem_limit),
    )(x, h, c_p, params["wx"], params["wh_rows"], params["b"])
    return c_out[:, :H], h_out[:, :H]


# ----------------------------------------------------------------------------
# Whole-sequence kernel: T steps inside one pallas_call, K steps per grid step.
#   - x @ Wx + b precomputed for all timesteps as one big GEMM (outside),
#     streamed into the kernel as a bf16 (K, Bp, 4*Hp) slab per grid step.
#   - Wh resident in VMEM, single-buffered (constant index_map -> one fetch).
#   - h / C carried in vregs inside a chunk (unrolled fori_loop) and in the
#     constant-index output blocks across chunks.
# ----------------------------------------------------------------------------
def _lstm_seq_kernel(xw_ref, wh_ref, h0_ref, c0_ref,
                     hseq_ref, c_out_ref, h_out_ref):
    t = pl.program_id(0)
    K = xw_ref.shape[0]
    Hp = h_out_ref.shape[-1]

    @pl.when(t == 0)
    def _():
        h_out_ref[...] = h0_ref[...]
        c_out_ref[...] = c0_ref[...]

    wh = wh_ref[...]                       # loaded once per grid step

    def step(k, carry):
        c, h = carry
        # Only the small recurrent matmul stays in the serial recurrence.
        gates = xw_ref[k].astype(jnp.float32) + jnp.dot(
            h.astype(jnp.bfloat16), wh, preferred_element_type=jnp.float32)
        i = _sigmoid(gates[:, 0 * Hp:1 * Hp])
        f = _sigmoid(gates[:, 1 * Hp:2 * Hp])
        g = jnp.tanh(gates[:, 2 * Hp:3 * Hp])
        o = _sigmoid(gates[:, 3 * Hp:4 * Hp])
        c = f * c + i * g
        h = o * jnp.tanh(c)
        hseq_ref[k] = h
        return c, h

    c, h = jax.lax.fori_loop(0, K, step,
                             (c_out_ref[...], h_out_ref[...]), unroll=True)
    c_out_ref[...] = c
    h_out_ref[...] = h


def lstm_sequence(x_seq, C0, h0, params, chunk=8):
    """Run T LSTMCell steps in one kernel. x_seq: (T, B, D).

    Returns (h_seq (T,B,H), c_T (B,H), h_T (B,H)).
    """
    T, B, D = x_seq.shape
    H, Hp = params["H"], params["Hp"]
    Bp = _round_up(B, BF16_SUBLANES)       # bf16 vreg = 16 sublanes x 128 lanes
    K = _pick_chunk(T, chunk)              # timesteps per grid step

    # Pad the batch once BEFORE the hoisted projection so the big GEMM writes
    # the (T, Bp, 4*Hp) kernel layout directly (no extra pad pass over xw).
    x_p = jnp.pad(x_seq, ((0, 0), (0, Bp - B), (0, 0))).astype(jnp.bfloat16)
    xw = jnp.dot(x_p.reshape(T * Bp, D), params["wx"],
                 preferred_element_type=jnp.float32) + params["b"]
    xw = xw.reshape(T, Bp, 4 * Hp).astype(jnp.bfloat16)   # streamed slab, bf16

    h0_p = jnp.pad(h0, ((0, Bp - B), (0, Hp - H)))
    c0_p = jnp.pad(C0, ((0, Bp - B), (0, Hp - H)))

    # VMEM budget: Wh (single-buffered) + double-buffered xw / hseq slabs +
    # carried state blocks, with headroom for in-kernel temporaries.
    bytes_wh = params["wh"].size * 2                    # bf16, 1 buffer
    bytes_xw = 2 * K * Bp * 4 * Hp * 2                  # bf16, 2 buffers
    bytes_hseq = 2 * K * Bp * Hp * 4                    # f32,  2 buffers
    bytes_state = 8 * Bp * Hp * 4                       # h0/c0/carries
    needed = bytes_wh + bytes_xw + bytes_hseq + bytes_state
    vmem_limit = int(min(max(2 * needed, 32 << 20), 96 << 20))

    h_seq, c_T, h_T = pl.pallas_call(
        _lstm_seq_kernel,
        out_shape=(jax.ShapeDtypeStruct((T, Bp, Hp), jnp.float32),
                   jax.ShapeDtypeStruct((Bp, Hp), jnp.float32),
                   jax.ShapeDtypeStruct((Bp, Hp), jnp.float32)),
        grid=(T // K,),
        in_specs=[
            pl.BlockSpec((K, Bp, 4 * Hp), lambda t: (t, 0, 0)),   # xw chunk
            pl.BlockSpec((Hp, 4 * Hp), lambda t: (0, 0),
                         pipeline_mode=pl.Buffered(1)),           # Wh resident
            pl.BlockSpec((Bp, Hp), lambda t: (0, 0)),             # h0
            pl.BlockSpec((Bp, Hp), lambda t: (0, 0)),             # C0
        ],
        out_specs=(
            pl.BlockSpec((K, Bp, Hp), lambda t: (t, 0, 0)),       # h chunk
            pl.BlockSpec((Bp, Hp), lambda t: (0, 0)),             # carried C
            pl.BlockSpec((Bp, Hp), lambda t: (0, 0)),             # carried h
        ),
        compiler_params=pltpu.CompilerParams(
            dimension_semantics=("arbitrary",),
            vmem_limit_bytes=vmem_limit),
    )(xw, params["wh"], h0_p, c0_p)
    return h_seq[:, :B, :H], c_T[:B, :H], h_T[:B, :H]


# ----------------------------------------------------------------------------
# Plain-JAX references mirroring the PyTorch forward (all f32).
# ----------------------------------------------------------------------------
def lstm_cell_ref(x, C, h, wx, wh, b):
    H = wh.shape[0]
    gates = x @ wx + h @ wh + b[None, :]
    i = jax.nn.sigmoid(gates[:, 0 * H:1 * H])
    f = jax.nn.sigmoid(gates[:, 1 * H:2 * H])
    g = jnp.tanh(gates[:, 2 * H:3 * H])
    o = jax.nn.sigmoid(gates[:, 3 * H:4 * H])
    c_out = f * C + i * g
    h_out = o * jnp.tanh(c_out)
    return c_out, h_out


def lstm_sequence_ref(x_seq, C0, h0, wx, wh, b):
    def step(carry, x):
        C, h = carry
        c, hn = lstm_cell_ref(x, C, h, wx, wh, b)
        return (c, hn), hn
    (cT, hT), h_seq = jax.lax.scan(step, (C0, h0), x_seq)
    return h_seq, cT, hT


if __name__ == "__main__":
    # string.printable has 100 characters -> input_dim = 100.
    batch = 8
    input_dim = 100
    hidden_dim = 32      # small test size (module uses 256); padded to 128
    seq_len = 8

    key = jax.random.PRNGKey(0)
    kx, kc, kh, kwx, kwh, kb, kxs = jax.random.split(key, 7)

    x = jax.random.normal(kx, (batch, input_dim), dtype=jnp.float32)
    C = jax.random.normal(kc, (batch, hidden_dim), dtype=jnp.float32)
    h = jax.random.normal(kh, (batch, hidden_dim), dtype=jnp.float32)

    # Fused gate parameters [i, f, g, o] (nn.Linear weights transposed,
    # input/hidden biases pre-summed).
    wx = 0.1 * jax.random.normal(kwx, (input_dim, 4 * hidden_dim),
                                 dtype=jnp.float32)
    wh = 0.1 * jax.random.normal(kwh, (hidden_dim, 4 * hidden_dim),
                                 dtype=jnp.float32)
    b = 0.1 * jax.random.normal(kb, (4 * hidden_dim,), dtype=jnp.float32)

    params = prepare_params(wx, wh, b)

    # --- single step (== module forward) ---
    c_out, h_out = lstm_cell(x, C, h, params)
    jax.block_until_ready((c_out, h_out))
    c_r, h_r = lstm_cell_ref(x, C, h, wx, wh, b)
    # bf16 MXU inputs -> loosened tolerance vs the all-f32 reference.
    assert jnp.allclose(c_out, c_r, atol=5e-2, rtol=5e-2), "c mismatch"
    assert jnp.allclose(h_out, h_r, atol=5e-2, rtol=5e-2), "h mismatch"

    # --- T-step rollout in one kernel ---
    x_seq = jax.random.normal(kxs, (seq_len, batch, input_dim),
                              dtype=jnp.float32)
    h_seq, c_T, h_T = lstm_sequence(x_seq, C, h, params)
    jax.block_until_ready((h_seq, c_T, h_T))
    h_seq_r, c_T_r, h_T_r = lstm_sequence_ref(x_seq, C, h, wx, wh, b)
    assert jnp.allclose(h_seq, h_seq_r, atol=1e-1, rtol=1e-1), "h_seq mismatch"
    assert jnp.allclose(c_T, c_T_r, atol=1e-1, rtol=1e-1), "c_T mismatch"
    assert jnp.allclose(h_T, h_T_r, atol=1e-1, rtol=1e-1), "h_T mismatch"

    print("KERNEL_OK")
</pallas_src>

<mosaic_0001>
module attributes {stable_mosaic.version = 11 : i64} {
  func.func @_lstm_cell_kernel(%arg0: memref<8x100xf32, #tpu.memory_space<vmem>>, %arg1: memref<8x32xf32, #tpu.memory_space<vmem>>, %arg2: memref<8x128xf32, #tpu.memory_space<vmem>>, %arg3: memref<100x512xbf16, #tpu.memory_space<vmem>>, %arg4: memref<32x512xbf16, #tpu.memory_space<vmem>>, %arg5: memref<1x512xf32, #tpu.memory_space<vmem>>, %arg6: memref<8x128xf32, #tpu.memory_space<vmem>>, %arg7: memref<8x128xf32, #tpu.memory_space<vmem>>) attributes {dimension_semantics = [], scalar_prefetch = 0 : i64, scratch_operands = 0 : i64, tpu.core_type = #tpu.core_type<tc>} {
    %c0 = arith.constant 0 : index
    %c0_0 = arith.constant 0 : index
    %0 = vector.load %arg0[%c0, %c0_0] : memref<8x100xf32, #tpu.memory_space<vmem>>, vector<8x100xf32>
    %1 = arith.truncf %0 : vector<8x100xf32> to vector<8x100xbf16>
    %c0_1 = arith.constant 0 : index
    %c0_2 = arith.constant 0 : index
    %2 = vector.load %arg3[%c0_1, %c0_2] : memref<100x512xbf16, #tpu.memory_space<vmem>>, vector<100x512xbf16>
    %cst = arith.constant dense<0.000000e+00> : vector<8x512xf32>
    %3 = tpu.matmul %1, %2, %cst {dimension_numbers = #tpu.dot_dimension_numbers<[1], [0], [0], [1], [0, 0, 1, 1], [], []>} : vector<8x100xbf16>, vector<100x512xbf16>, vector<8x512xf32> -> vector<8x512xf32>
    %c0_3 = arith.constant 0 : index
    %c0_4 = arith.constant 0 : index
    %4 = vector.load %arg1[%c0_3, %c0_4] : memref<8x32xf32, #tpu.memory_space<vmem>>, vector<8x32xf32>
    %5 = arith.truncf %4 : vector<8x32xf32> to vector<8x32xbf16>
    %c0_5 = arith.constant 0 : index
    %c0_6 = arith.constant 0 : index
    %6 = vector.load %arg4[%c0_5, %c0_6] : memref<32x512xbf16, #tpu.memory_space<vmem>>, vector<32x512xbf16>
    %cst_7 = arith.constant dense<0.000000e+00> : vector<8x512xf32>
    %7 = tpu.matmul %5, %6, %cst_7 {dimension_numbers = #tpu.dot_dimension_numbers<[1], [0], [0], [1], [0, 0, 1, 1], [], []>} : vector<8x32xbf16>, vector<32x512xbf16>, vector<8x512xf32> -> vector<8x512xf32>
    %8 = arith.addf %3, %7 : vector<8x512xf32>
    %c0_8 = arith.constant 0 : index
    %c0_9 = arith.constant 0 : index
    %9 = vector.load %arg5[%c0_8, %c0_9] : memref<1x512xf32, #tpu.memory_space<vmem>>, vector<1x512xf32>
    %10 = vector.broadcast %9 : vector<1x512xf32> to vector<8x512xf32>
    %11 = arith.addf %8, %10 : vector<8x512xf32>
    %12 = vector.extract_strided_slice %11 {offsets = [0, 0], sizes = [8, 128], strides = [1, 1]} : vector<8x512xf32> to vector<8x128xf32>
    %cst_10 = arith.constant 5.000000e-01 : f32
    %13 = vector.broadcast %cst_10 : f32 to vector<8x128xf32>
    %14 = arith.mulf %13, %12 : vector<8x128xf32>
    %15 = math.tanh %14 : vector<8x128xf32>
    %cst_11 = arith.constant 5.000000e-01 : f32
    %16 = vector.broadcast %cst_11 : f32 to vector<8x128xf32>
    %17 = arith.mulf %16, %15 : vector<8x128xf32>
    %cst_12 = arith.constant 5.000000e-01 : f32
    %18 = vector.broadcast %cst_12 : f32 to vector<8x128xf32>
    %19 = arith.addf %17, %18 : vector<8x128xf32>
    %20 = vector.extract_strided_slice %11 {offsets = [0, 128], sizes = [8, 128], strides = [1, 1]} : vector<8x512xf32> to vector<8x128xf32>
    %cst_13 = arith.constant 5.000000e-01 : f32
    %21 = vector.broadcast %cst_13 : f32 to vector<8x128xf32>
    %22 = arith.mulf %21, %20 : vector<8x128xf32>
    %23 = math.tanh %22 : vector<8x128xf32>
    %cst_14 = arith.constant 5.000000e-01 : f32
    %24 = vector.broadcast %cst_14 : f32 to vector<8x128xf32>
    %25 = arith.mulf %24, %23 : vector<8x128xf32>
    %cst_15 = arith.constant 5.000000e-01 : f32
    %26 = vector.broadcast %cst_15 : f32 to vector<8x128xf32>
    %27 = arith.addf %25, %26 : vector<8x128xf32>
    %28 = vector.extract_strided_slice %11 {offsets = [0, 256], sizes = [8, 128], strides = [1, 1]} : vector<8x512xf32> to vector<8x128xf32>
    %29 = math.tanh %28 : vector<8x128xf32>
    %30 = vector.extract_strided_slice %11 {offsets = [0, 384], sizes = [8, 128], strides = [1, 1]} : vector<8x512xf32> to vector<8x128xf32>
    %cst_16 = arith.constant 5.000000e-01 : f32
    %31 = vector.broadcast %cst_16 : f32 to vector<8x128xf32>
    %32 = arith.mulf %31, %30 : vector<8x128xf32>
    %33 = math.tanh %32 : vector<8x128xf32>
    %cst_17 = arith.constant 5.000000e-01 : f32
    %34 = vector.broadcast %cst_17 : f32 to vector<8x128xf32>
    %35 = arith.mulf %34, %33 : vector<8x128xf32>
    %cst_18 = arith.constant 5.000000e-01 : f32
    %36 = vector.broadcast %cst_18 : f32 to vector<8x128xf32>
    %37 = arith.addf %35, %36 : vector<8x128xf32>
    %c0_19 = arith.constant 0 : index
    %c0_20 = arith.constant 0 : index
    %38 = vector.load %arg2[%c0_19, %c0_20] : memref<8x128xf32, #tpu.memory_space<vmem>>, vector<8x128xf32>
    %39 = arith.mulf %27, %38 : vector<8x128xf32>
    %40 = arith.mulf %19, %29 : vector<8x128xf32>
    %41 = arith.addf %39, %40 : vector<8x128xf32>
    %c0_21 = arith.constant 0 : index
    %c0_22 = arith.constant 0 : index
    %42 = vector.load %arg6[%c0_21, %c0_22] : memref<8x128xf32, #tpu.memory_space<vmem>>, vector<8x128xf32>
    tpu.vector_store %arg6[%c0_21, %c0_22], %41 {strides = array<i32>} : memref<8x128xf32, #tpu.memory_space<vmem>>, vector<8x128xf32>,
    %43 = math.tanh %41 : vector<8x128xf32>
    %44 = arith.mulf %37, %43 : vector<8x128xf32>
    %c0_23 = arith.constant 0 : index
    %c0_24 = arith.constant 0 : index
    %45 = vector.load %arg7[%c0_23, %c0_24] : memref<8x128xf32, #tpu.memory_space<vmem>>, vector<8x128xf32>
    tpu.vector_store %arg7[%c0_23, %c0_24], %44 {strides = array<i32>} : memref<8x128xf32, #tpu.memory_space<vmem>>, vector<8x128xf32>,
    return
  }
}

</mosaic_0001>

<bundles_post_ra>
// kernel: tpu_custom_call.1
= control target key start
LH: loop header
LB: loop body
LE: loop exit
PB: predicated region body
PF: predicated region fallthrough
CT: control target
= control target key end

     0   :  { %13 = vsyncpa [#allocation3], 0  ;;  %s949_s0 = inlined_call_operand.hbm [shape: f32[8,100], index: 0, kind: input, shape index: {}]   ;;  %s950_s1 = inlined_call_operand.hbm [shape: f32[8,32], index: 1, kind: input, shape index: {}]   ;;  %s951_s2 = inlined_call_operand.hbm [shape: f32[8,128], index: 2, kind: input, shape index: {}]   ;;  %s952_s3 = inlined_call_operand.hbm [shape: bf16[100,512], index: 3, kind: input, shape index: {}]   ;;  %s953_s4 = inlined_call_operand.hbm [shape: bf16[32,512], index: 4, kind: input, shape index: {}]   ;;  %s954_s5 = inlined_call_operand.vmem [shape: f32[1,512], index: 5, kind: input, shape index: {}]   ;;  %s955_s6 = inlined_call_operand.hbm [shape: f32[8,128], index: 6, kind: output, shape index: {0}]   ;;  %s956_s7 = inlined_call_operand.hbm [shape: f32[8,128], index: 7, kind: output, shape index: {1}]  }
   0x1   :  { %14 = vsyncpa [#allocation6], 0 }
   0x2   :  { %15 = vsyncpa [#allocation9], 0 }
   0x3   :  { %16 = vsyncpa [#allocation4], 0  ;;  %s34_s26 = sshll.u32 %s950_s1, 4  ;;  %s35_s26 = int_to_ptr.hbm [resolvable:$true] %s34_s26 }
   0x4   :  { %17 = vsyncpa [#allocation13], 0  ;;  %s868_s27 = smov [#allocation5]   ;;  %s55_s8 = sshll.u32 %s952_s3, 4  ;;  %s56_s8 = int_to_ptr.hbm [resolvable:$true] %s55_s8 }
   0x5   :  { %s36_s28 = sshll.u32 %s868_s27, 4  ;;  %s869_s9 = smov [#allocation8]   ;;  %s37_s28 = int_to_ptr.vmem [resolvable:$true] %s36_s28 }
   0x6   :  { %39 = dma.hbm_to_vmem [thread:$0]  %s35_s26, 128, %s37_s28, [#allocation6]  }
   0x7   :  { %s57_s10 = sshll.u32 %s869_s9, 4  ;;  %s870_s11 = smov 256   ;;  %s58_s10 = int_to_ptr.vmem [resolvable:$true] %s57_s10 }
   0x8   :  { %s871_s12 = smov 16   ;;  %s23_s1 = sshll.u32 %s949_s0, 4  ;;  %s24_s1 = int_to_ptr.hbm [resolvable:$true] %s23_s1 }
   0x9   :  { %63 = dma.hbm_to_vmem [thread:$0]  %s56_s8, 3328, %s58_s10, [#allocation9], %s870_s11, %s870_s11, %s871_s12  }
   0xa   :  { %s872_s15 = smov [#allocation2]   ;;  %s45_s3 = sshll.u32 %s951_s2, 4  ;;  %s46_s3 = int_to_ptr.hbm [resolvable:$true] %s45_s3 }
   0xb   :  { %s25_s16 = sshll.u32 %s872_s15, 4  ;;  %s873_s19 = smov [#allocation7]   ;;  %s26_s16 = int_to_ptr.vmem [resolvable:$true] %s25_s16 }
   0xc   :  { %28 = dma.hbm_to_vmem [thread:$0]  %s24_s1, 128, %s26_s16, [#allocation3]  }
   0xd   :  { %s47_s20 = sshll.u32 %s873_s19, 4  ;;  %s68_s23 = sshll.u32 %s953_s4, 4  ;;  %s48_s20 = int_to_ptr.vmem [resolvable:$true] %s47_s20  ;;  %s69_s23 = int_to_ptr.hbm [resolvable:$true] %s68_s23 }
   0xe   :  { %50 = dma.hbm_to_vmem [thread:$0]  %s46_s3, 128, %s48_s20, [#allocation6]  }
   0xf   :  { %s874_s0 = smov [#allocation10]  }
  0x10   :  { %s70_s24 = sshll.u32 %s874_s0, 4  ;;  %s71_s24 = int_to_ptr.vmem [resolvable:$true] %s70_s24 }
  0x11   :  { %76 = dma.hbm_to_vmem [thread:$0]  %s69_s23, 1024, %s71_s24, [#allocation9], %s870_s11, %s870_s11, %s871_s12  }
  0x12   :  { %858 = dma.done.wait [#allocation3], 128  }
  0x13   :  { %859 = vsyncadd [#allocation3], 4294967168 }
  0x14   :  { %860 = dma.done.wait [#allocation6], 256  }
  0x15   :  { %861 = vsyncadd [#allocation6], 4294967040 }
  0x16   :  { %862 = dma.done.wait [#allocation9], 4352  }
  0x17   :  { %863 = vsyncadd [#allocation9], 4294962944  ;;  %v521_v0 = vld [vmem:[#allocation10 + $0x20] sm:$0xf]  ;;  %v669_v1 = vld [vmem:[#allocation10 + $0x2c] sm:$0xf0] }
  0x18   :  { %v667_v2 = vld [vmem:[#allocation10 + $0x24] sm:$0xf]  ;;  %v522_v3 = vor.u32 %v669_v1, %v521_v0  ;;  %v523_v4 = vld [vmem:[#allocation10 + $0x30] sm:$0xf0]  ;;  %v529_v5 = vld [vmem:[#allocation10 + $0x28] sm:$0xf] }
  0x19   :  { %v670_v6 = vld [vmem:[#allocation10 + $0x34] sm:$0xf0]  ;;  %v526_v7 = vor.u32 %v667_v2, %v523_v4  ;;  %v668_v9 = vld [vmem:[#allocation10 + $0x2c] sm:$0xf]  ;;  %v531_v10 = vld [vmem:[#allocation10 + $0x38] sm:$0xf0] }
  0x1a   :  { %v530_v8 = vor.u32 %v670_v6, %v529_v5  ;;  %v505_v11 = vld [vmem:[#allocation10] sm:$0xf]  ;;  %188 = vmatpush.bf16.msra.mxu0 %v522_v3  ;;  %v534_v12 = vor.u32 %v668_v9, %v531_v10  ;;  %v665_v13 = vld [vmem:[#allocation10 + $0xc] sm:$0xf0]  ;;  %v663_v14 = vld [vmem:[#allocation10 + $0x4] sm:$0xf] }
  0x1b   :  { %v507_v15 = vld [vmem:[#allocation10 + $0x10] sm:$0xf0]  ;;  %201 = vmatpush.bf16.msra.mxu1 %v526_v7  ;;  %v506_v16 = vor.u32 %v665_v13, %v505_v11  ;;  %v513_v18 = vld [vmem:[#allocation10 + $0x8] sm:$0xf]  ;;  %v666_v19 = vld [vmem:[#allocation10 + $0x14] sm:$0xf0] }
  0x1c   :  { %214 = vmatpush.bf16.msra.mxu2 %v530_v8  ;;  %v510_v17 = vor.u32 %v663_v14, %v507_v15  ;;  %v664_v20 = vld [vmem:[#allocation10 + $0xc] sm:$0xf]  ;;  %227 = vmatpush.bf16.msra.mxu3 %v534_v12  ;;  %v514_v21 = vor.u32 %v666_v19, %v513_v18  ;;  %v515_v22 = vld [vmem:[#allocation10 + $0x18] sm:$0xf0]  ;;  %v126_v23 = vld [vmem:[#allocation8 + $0xc0] sm:$0x33] }
  0x1d   :  { %v127_v24 = vld [vmem:[#allocation8 + $0xc8] sm:$0x33]  ;;  %v518_v25 = vor.u32 %v664_v20, %v515_v22  ;;  %v308_v26 = vunpack.c.l.b16 %v126_v23  ;;  %v309_v27 = vunpack.c.h.b16 %v126_v23  ;;  %v128_v29 = vld [vmem:[#allocation5] sm:$0xff]  ;;  %vm368_vm0 = vcmask 1041408   ;;  %v621_v32 = vld [vmem:[#allocation8 + $0xa0] sm:$0xf] }
  0x1e   :  { %v310_v28 = vunpack.c.l.b16 %v127_v24  ;;  %189 = vmatpush.bf16.msra.mxu0 %v506_v16  ;;  %v311_v30 = vunpack.c.h.b16 %v127_v24  ;;  %v129_v31 = vpack.c.bf16 %v128_v29, %v128_v29  ;;  %vm178_vm1 = vcmask 261120   ;;  %v661_v33 = vld [vmem:[#allocation8 + $0xac] sm:$0xf0]  ;;  %v659_v37 = vld [vmem:[#allocation8 + $0xa4] sm:$0xf]  ;;  %s475_s28 = sshll.u32 %s955_s6, 4  ;;  %s476_s28 = int_to_ptr.hbm [resolvable:$true] %s475_s28 }
  0x1f   :  { %202 = vmatpush.bf16.msra.mxu1 %v510_v17  ;;  %v336_v34 = vpack.c.b16 %v308_v26, %v308_v26  ;;  %v337_v35 = vpack.c.b16 %v309_v27, %v309_v27  ;;  %v623_v38 = vld [vmem:[#allocation8 + $0xb0] sm:$0xf0]  ;;  %v629_v39 = vld [vmem:[#allocation8 + $0xa8] sm:$0xf]  ;;  %v662_v41 = vld [vmem:[#allocation8 + $0xb4] sm:$0xf0]  ;;  %v622_v48 = vor.u32 %v661_v33, %v621_v32 }
  0x20   :  { %215 = vmatpush.bf16.msra.mxu2 %v514_v21  ;;  %v338_v36 = vpack.c.b16 %v310_v28, %v310_v28  ;;  %228 = vmatpush.bf16.msra.mxu3 %v518_v25  ;;  %v339_v40 = vpack.c.b16 %v311_v30, %v311_v30  ;;  %v660_v42 = vld [vmem:[#allocation8 + $0xac] sm:$0xf]  ;;  %v631_v43 = vld [vmem:[#allocation8 + $0xb8] sm:$0xf0]  ;;  %v626_v49 = vor.u32 %v659_v37, %v623_v38  ;;  %v605_v50 = vld [vmem:[#allocation8 + $0x80] sm:$0xf] }
  0x21   :  { %v370_v44 = vsel %vm368_vm0, %v336_v34, 0  ;;  %v373_v45 = vsel %vm368_vm0, %v337_v35, 0  ;;  %535 = vmatmul.msk.bf16.vlgmr.msra.gmra.mxu0 %vm178_vm1, %v129_v31  ;;  %v657_v51 = vld [vmem:[#allocation8 + $0x8c] sm:$0xf0]  ;;  %v630_v52 = vor.u32 %v662_v41, %v629_v39  ;;  %v634_v53 = vor.u32 %v660_v42, %v631_v43  ;;  %v655_v54 = vld [vmem:[#allocation8 + $0x84] sm:$0xf] }
  0x22   :  { %v376_v46 = vsel %vm368_vm0, %v338_v36, 0  ;;  %382 = vmatpush.bf16.msrb.mxu0 %v370_v44  ;;  %v379_v47 = vsel %vm368_vm0, %v339_v40, 0  ;;  %v607_v55 = vld [vmem:[#allocation8 + $0x90] sm:$0xf0]  ;;  %v613_v56 = vld [vmem:[#allocation8 + $0x88] sm:$0xf]  ;;  %536 = vmatmul.msk.bf16.vlgmr.msra.gmra.mxu1 %vm178_vm1, %v129_v31  ;;  %v606_v60 = vor.u32 %v657_v51, %v605_v50 }
  0x23   :  { %395 = vmatpush.bf16.msrb.mxu1 %v373_v45  ;;  %537 = vmatmul.msk.bf16.vlgmr.msra.gmra.mxu2 %vm178_vm1, %v129_v31  ;;  %v658_v57 = vld [vmem:[#allocation8 + $0x94] sm:$0xf0]  ;;  %v656_v58 = vld [vmem:[#allocation8 + $0x8c] sm:$0xf]  ;;  %v615_v59 = vld [vmem:[#allocation8 + $0x98] sm:$0xf0]  ;;  %v610_v61 = vor.u32 %v655_v54, %v607_v55 }
  0x24   :  { %408 = vmatpush.bf16.msrb.mxu2 %v376_v46  ;;  %421 = vmatpush.bf16.msrb.mxu3 %v379_v47  ;;  %v589_v62 = vld [vmem:[#allocation8 + $0x60] sm:$0xf]  ;;  %v653_v63 = vld [vmem:[#allocation8 + $0x6c] sm:$0xf0]  ;;  %v614_v0 = vor.u32 %v658_v57, %v613_v56  ;;  %v618_v1 = vor.u32 %v656_v58, %v615_v59  ;;  %v651_v2 = vld [vmem:[#allocation8 + $0x64] sm:$0xf] }
  0x25   :  { %538 = vmatmul.msk.bf16.vlgmr.msra.gmra.mxu3 %vm178_vm1, %v129_v31  ;;  %v591_v3 = vld [vmem:[#allocation8 + $0x70] sm:$0xf0]  ;;  %v597_v4 = vld [vmem:[#allocation8 + $0x68] sm:$0xf]  ;;  %v654_v5 = vld [vmem:[#allocation8 + $0x74] sm:$0xf0]  ;;  %v590_v8 = vor.u32 %v653_v63, %v589_v62 }
  0x26   :  { %383 = vmatpush.bf16.msrb.mxu0 %v622_v48  ;;  %v652_v6 = vld [vmem:[#allocation8 + $0x6c] sm:$0xf]  ;;  %v599_v7 = vld [vmem:[#allocation8 + $0x78] sm:$0xf0]  ;;  %v594_v9 = vor.u32 %v651_v2, %v591_v3  ;;  %v573_v10 = vld [vmem:[#allocation8 + $0x40] sm:$0xf]  ;;  %v598_v12 = vor.u32 %v654_v5, %v597_v4 }
  0x27   :  { %396 = vmatpush.bf16.msrb.mxu1 %v626_v49  ;;  %v649_v11 = vld [vmem:[#allocation8 + $0x4c] sm:$0xf0]  ;;  %v602_v13 = vor.u32 %v652_v6, %v599_v7  ;;  %v647_v14 = vld [vmem:[#allocation8 + $0x44] sm:$0xf]  ;;  %v575_v15 = vld [vmem:[#allocation8 + $0x50] sm:$0xf0] }
  0x28   :  { %409 = vmatpush.bf16.msrb.mxu2 %v630_v52  ;;  %422 = vmatpush.bf16.msrb.mxu3 %v634_v53  ;;  %v581_v16 = vld [vmem:[#allocation8 + $0x48] sm:$0xf]  ;;  %v650_v17 = vld [vmem:[#allocation8 + $0x54] sm:$0xf0]  ;;  %v648_v18 = vld [vmem:[#allocation8 + $0x4c] sm:$0xf]  ;;  %v574_v20 = vor.u32 %v649_v11, %v573_v10  ;;  %v578_v21 = vor.u32 %v647_v14, %v575_v15 }
  0x29   :  { %v583_v19 = vld [vmem:[#allocation8 + $0x58] sm:$0xf0]  ;;  %v557_v22 = vld [vmem:[#allocation8 + $0x20] sm:$0xf]  ;;  %v645_v23 = vld [vmem:[#allocation8 + $0x2c] sm:$0xf0]  ;;  %v582_v24 = vor.u32 %v650_v17, %v581_v16 }
  0x2a   :  { %384 = vmatpush.bf16.msrb.mxu0 %v606_v60  ;;  %v586_v25 = vor.u32 %v648_v18, %v583_v19  ;;  %v643_v26 = vld [vmem:[#allocation8 + $0x24] sm:$0xf]  ;;  %v559_v27 = vld [vmem:[#allocation8 + $0x30] sm:$0xf0]  ;;  %v565_v28 = vld [vmem:[#allocation8 + $0x28] sm:$0xf]  ;;  %v558_v32 = vor.u32 %v645_v23, %v557_v22 }
  0x2b   :  { %397 = vmatpush.bf16.msrb.mxu1 %v610_v61  ;;  %v646_v29 = vld [vmem:[#allocation8 + $0x34] sm:$0xf0]  ;;  %v644_v30 = vld [vmem:[#allocation8 + $0x2c] sm:$0xf]  ;;  %v567_v31 = vld [vmem:[#allocation8 + $0x38] sm:$0xf0]  ;;  %v562_v33 = vor.u32 %v643_v26, %v559_v27 }
  0x2c   :  { %410 = vmatpush.bf16.msrb.mxu2 %v614_v0  ;;  %423 = vmatpush.bf16.msrb.mxu3 %v618_v1  ;;  %v541_v34 = vld [vmem:[#allocation8] sm:$0xf]  ;;  %v641_v35 = vld [vmem:[#allocation8 + $0xc] sm:$0xf0]  ;;  %v566_v36 = vor.u32 %v646_v29, %v565_v28  ;;  %v570_v37 = vor.u32 %v644_v30, %v567_v31  ;;  %v639_v38 = vld [vmem:[#allocation8 + $0x4] sm:$0xf] }
  0x2d   :  { %v543_v39 = vld [vmem:[#allocation8 + $0x10] sm:$0xf0]  ;;  %v549_v40 = vld [vmem:[#allocation8 + $0x8] sm:$0xf]  ;;  %v642_v41 = vld [vmem:[#allocation8 + $0x14] sm:$0xf0]  ;;  %v542_v44 = vor.u32 %v641_v35, %v541_v34 }
  0x2e   :  { %385 = vmatpush.bf16.msrb.mxu0 %v590_v8  ;;  %v640_v42 = vld [vmem:[#allocation8 + $0xc] sm:$0xf]  ;;  %v551_v43 = vld [vmem:[#allocation8 + $0x18] sm:$0xf0]  ;;  %v546_v45 = vor.u32 %v639_v38, %v543_v39  ;;  %v550_v47 = vor.u32 %v642_v41, %v549_v40  ;;  %vm364_vm2 = vcmask 818176   ;;  %s876_s29 = smov [#allocation12]  }
  0x2f   :  { %398 = vmatpush.bf16.msrb.mxu1 %v594_v9  ;;  %v100_v46 = vld [vmem:[#allocation2] sm:$0xff]  ;;  %v554_v48 = vor.u32 %v640_v42, %v551_v43  ;;  %v460_v23 = vld [vmem:[#allocation7] sm:$0xff]  ;;  %s484_s30 = sshll.u32 %s876_s29, 4  ;;  %s486_s10 = sshll.u32 %s956_s7, 4  ;;  %s485_s30 = int_to_ptr.vmem [resolvable:$true] %s484_s30  ;;  %s487_s10 = int_to_ptr.hbm [resolvable:$true] %s486_s10 }
  0x30   :  { %411 = vmatpush.bf16.msrb.mxu2 %v598_v12  ;;  %424 = vmatpush.bf16.msrb.mxu3 %v602_v13  ;;  %v101_v49 = vpack.c.bf16 %v100_v46, %v100_v46  ;;  %v433_v58 = vld [vmem:[%s954_s5] sm:$0xf]  ;;  %s875_s5 = smov [#allocation11]  }
  0x31   :  { %v435_v59 = vperm.slane %v433_v58, 0  ;;  %v436_v60 = vperm.slane %v433_v58, 1  ;;  %v437_v5 = vperm.slane %v433_v58, 2  ;;  %v438_v6 = vperm.slane %v433_v58, 3  ;;  %s473_s25 = sshll.u32 %s875_s5, 4  ;;  %s474_s25 = int_to_ptr.vmem [resolvable:$true] %s473_s25 }
  0x32   :  { %386 = vmatpush.bf16.msrb.mxu0 %v574_v20 }
  0x33   :  { %399 = vmatpush.bf16.msrb.mxu1 %v578_v21 }
  0x34   :  { %412 = vmatpush.bf16.msrb.mxu2 %v582_v24  ;;  %425 = vmatpush.bf16.msrb.mxu3 %v586_v25 }
  0x36   :  { %387 = vmatpush.bf16.msrb.mxu0 %v558_v32 }
  0x37   :  { %400 = vmatpush.bf16.msrb.mxu1 %v562_v33 }
  0x38   :  { %413 = vmatpush.bf16.msrb.mxu2 %v566_v36  ;;  %426 = vmatpush.bf16.msrb.mxu3 %v570_v37 }
  0x3a   :  { %388 = vmatpush.bf16.msrb.mxu0 %v542_v44 }
  0x3b   :  { %401 = vmatpush.bf16.msrb.mxu1 %v546_v45 }
  0x3c   :  { %414 = vmatpush.bf16.msrb.mxu2 %v550_v47  ;;  %427 = vmatpush.bf16.msrb.mxu3 %v554_v48 }
  0x3d   :  { %635 = vmatmul.msk.bf16.vlgmr.msrb.gmra.mxu0 %vm364_vm2, %v101_v49 }
  0x3e   :  { %636 = vmatmul.msk.bf16.vlgmr.msrb.gmra.mxu1 %vm364_vm2, %v101_v49 }
  0x3f   :  { %637 = vmatmul.msk.bf16.vlgmr.msrb.gmra.mxu2 %vm364_vm2, %v101_v49  ;;  %638 = vmatmul.msk.bf16.vlgmr.msrb.gmra.mxu3 %vm364_vm2, %v101_v49 }
  0x9e   :  { %v191_v50 = vpop.f32.mrf.mxu0 }
  0x9f   :  { %v204_v51 = vpop.f32.mrf.mxu1 }
  0xa6   :  { %v193_v52 = vpop.f32.mrf.mxu0  ;;  %v217_v53 = vpop.f32.mrf.mxu2 }
  0xa7   :  { %v206_v55 = vpop.f32.mrf.mxu1 }
  0xa8   :  { %v230_v54 = vpop.f32.mrf.mxu3 }
  0xae   :  { %v219_v56 = vpop.f32.mrf.mxu2 }
  0xb0   :  { %v232_v57 = vpop.f32.mrf.mxu3 }
  0xba   :  { %v390_v61 = vpop.f32.mrf.mxu0 }
  0xbb   :  { %v403_v62 = vpop.f32.mrf.mxu1  ;;  %v391_v63 = vadd.f32 %v390_v61, %v191_v50 }
  0xbc   :  { %v404_v0 = vadd.f32 %v403_v62, %v204_v51 }
  0xbd   :  { %v443_v1 = vadd.f32 %v435_v59, %v391_v63 }
  0xbe   :  { %v444_v2 = vadd.f32 %v436_v60, %v404_v0 }
  0xbf   :  { %v447_v3 = vmul.f32 0.5, %v443_v1 }
  0xc0   :  { %v451_v4 = vmul.f32 0.5, %v444_v2 }
  0xc1   :  { %680 = vtanh.f32 %v447_v3 }
  0xc2   :  { %v416_v7 = vpop.f32.mrf.mxu2  ;;  %v429_v8 = vpop.f32.mrf.mxu3  ;;  %682 = vtanh.f32 %v451_v4 }
  0xc3   :  { %v417_v9 = vadd.f32 %v416_v7, %v217_v53  ;;  %v430_v10 = vadd.f32 %v429_v8, %v230_v54  ;;  %v392_v11 = vpop.f32.mrf.mxu0  ;;  %v405_v12 = vpop.f32.mrf.mxu1 }
  0xc5   :  { %v445_v13 = vadd.f32 %v437_v5, %v417_v9  ;;  %v446_v14 = vadd.f32 %v438_v6, %v430_v10 }
  0xc7   :  { %684 = vtanh.f32 %v445_v13  ;;  %v456_v15 = vmul.f32 0.5, %v446_v14  ;;  %v681_v16 = vpop.eup %680 }
  0xc8   :  { %v683_v17 = vpop.eup %682  ;;  %v449_v18 = vmul.f32 0.5, %v681_v16 }
  0xc9   :  { %v453_v19 = vmul.f32 0.5, %v683_v17  ;;  %686 = vtanh.f32 %v456_v15 }
  0xca   :  { %v418_v20 = vpop.f32.mrf.mxu2  ;;  %v431_v21 = vpop.f32.mrf.mxu3  ;;  %v450_v22 = vadd.f32 0.5, %v449_v18 }
  0xcb   :  { %v454_v24 = vadd.f32 0.5, %v453_v19 }
  0xcd   :  { %v685_v25 = vpop.eup %684  ;;  %v461_v26 = vmul.f32 %v460_v23, %v454_v24 }
  0xce   :  { %v462_v27 = vmul.f32 %v685_v25, %v450_v22 }
  0xcf   :  { %v687_v28 = vpop.eup %686 }
  0xd0   :  { %v463_v29 = vadd.f32 %v462_v27, %v461_v26  ;;  %v458_v30 = vmul.f32 0.5, %v687_v28 }
  0xd2   :  { %464 = vst [vmem:[#allocation11] sm:$0xff] %v463_v29  ;;  %688 = vtanh.f32 %v463_v29  ;;  %v459_v31 = vadd.f32 0.5, %v458_v30 }
  0xd3   :  { %478 = dma.vmem_to_hbm [thread:$0]  %s474_s25, 128, %s476_s28, [#allocation4]  }
  0xd8   :  { %v689_v32 = vpop.eup %688 }
  0xd9   :  { %v466_v33 = vmul.f32 %v689_v32, %v459_v31 }
  0xdb   :  { %467 = vst [vmem:[#allocation12] sm:$0xff] %v466_v33 }
  0xdc   :  { %489 = dma.vmem_to_hbm [thread:$0]  %s485_s30, 128, %s487_s10, [#allocation13]  }
  0xdd   :  { %864 = dma.done.wait [#allocation4], 128  }
  0xde   :  { %865 = vsyncadd [#allocation4], 4294967168 }
  0xdf   :  { %866 = dma.done.wait [#allocation13], 128  }
  0xe0   :  { %867 = vsyncadd [#allocation13], 4294967168 }
  0xe1   :  { %498 = vsyncpa [#allocation3], 1 }
  0xe2   :  { %499 = vsyncpa [#allocation6], 1 }
  0xe3   :  { %500 = vsyncpa [#allocation9], 1 }
  0xe4   :  { %501 = vsyncpa [#allocation4], 1 }
  0xe5   :  { %502 = vsyncpa [#allocation13], 1 }

</bundles_post_ra>
